<compile_context>
chip_gen: v5e
topology: v5e:2x2
jax: 0.10.0
libtpu: 0.0.40
codegen_flags: <defaults>
</compile_context>

<pallas_src>
import jax
import jax.numpy as jnp
from jax import lax
from jax.experimental import pallas as pl
from jax.experimental.pallas import tpu as pltpu


def crf_llh_kernel(h_ref, y_ref, m_ref, lens_ref, trans_t_ref, se_ref, out_ref):
    h = h_ref[...]                 # (B, S, L) f32   natural layout
    y = y_ref[...]                 # (B, S)    i32
    m = m_ref[...]                 # (B, S)    f32   0/1 mask
    lens = lens_ref[...]           # (B, 1)    i32   sequence lengths (prefix mask)
    trans_t = trans_t_ref[...]     # (L, L)    f32   TRANSPOSED: trans_t[j, i] = trans[i, j]
    se = se_ref[...]               # (2, L)    f32   row 0 = start_trans, row 1 = end_trans
    start = se[0:1, :]             # (1, L)
    end = se[1:2, :]               # (1, L)

    B, S, L = h.shape

    # ---------------- numerator (gold path score), fully fused ------------------
    onehot = (lax.broadcasted_iota(jnp.int32, (B, S, L), 2)
              == y[:, :, None]).astype(jnp.float32)                      # (B,S,L) dense tiles

    m3 = m[:, :, None]                                                   # (B,S,1)
    oh_m = onehot * m3                                                   # (B,S,L)

    # start_trans[y[:, 0]]  (unmasked, exactly like TorchCRF)
    start_term = jnp.sum(start * onehot[:, 0, :], axis=1, keepdims=True)  # (B,1)

    # sum_t h[b,t,y[b,t]] * m[b,t]  (the t = S-1 term equals TorchCRF's
    # each_last_score because it is gated by mask[:, S-1]).
    em = jnp.sum(jnp.sum(h * oh_m, axis=2), axis=1, keepdims=True)        # (B,1)

    # sum_t trans[y[b,t], y[b,t+1]] * m[b,t+1] via a row-select contraction:
    # rows[b,s,:] = trans[y[b,s], :]  (tiny batched matmul -> MXU), then one masked
    # lane reduce against the "next" one-hot.
    oh_prev = onehot[:, :-1, :]                                           # (B,S-1,L)
    oh_next = onehot[:, 1:, :]                                            # (B,S-1,L)
    mn3 = m[:, 1:][:, :, None]                                            # (B,S-1,1)
    trans_t_b = jnp.broadcast_to(trans_t[None, :, :], (B, L, L))          # hoisted once
    rows = jnp.einsum('bsl,bml->bsm', oh_prev, trans_t_b,
                      preferred_element_type=jnp.float32)                 # (B,S-1,L)
    tr = jnp.sum(jnp.sum(rows * oh_next * mn3, axis=2),
                 axis=1, keepdims=True)                                   # (B,1)

    # end_trans[y[b, last]]: one-hot of the last valid label.  For a prefix mask,
    # mask[t] - mask[t+1] selects the last valid step; zero-length rows give 0
    # (documented divergence from TorchCRF's wrap-around index).
    last_lab_oh = (jnp.sum(oh_m, axis=1)
                   - jnp.sum(oh_prev * mn3, axis=1))                      # (B,L)
    end_term = jnp.sum(end * last_lab_oh, axis=1, keepdims=True)          # (B,1)

    num = start_term + em + tr + end_term                                 # (B,1)

    # ---------------- denominator (serial forward / logsumexp recursion) --------
    # Loop invariants hoisted off the serial chain:
    #   * keep mask as (S, B, 1) bool -> free leading-axis index per step
    #   * emission columns h[..., None] (L on sublanes) built once for all steps
    #   * trans^T passed in pre-transposed
    keep3 = (lax.broadcasted_iota(jnp.int32, (S, B, 1), 0)
             < lens[None, :, :])                                          # (S,B,1) bool
    h_col = h[:, :, :, None]                                              # (B,S,L,1)

    score = start + h[:, 0, :]                                            # (B,L), L on lanes
    for t in range(1, S):
        # st[b, j, i] = score[b, i] + h[b, t, j] + trans[i, j]; the carried score
        # stays lane-resident and the logsumexp reduce runs over the lane axis.
        st = score[:, None, :] + h_col[:, t] + trans_t[None, :, :]        # (B,L,L)
        mx = jnp.max(st, axis=2, keepdims=True)                           # (B,L,1)
        lse = jnp.log(jnp.sum(jnp.exp(st - mx), axis=2, keepdims=True)) + mx
        score = jnp.where(keep3[t], lse[:, :, 0], score)                  # (B,L)
    score = score + end
    mx = jnp.max(score, axis=1, keepdims=True)
    den = jnp.log(jnp.sum(jnp.exp(score - mx), axis=1, keepdims=True)) + mx  # (B,1)

    # ---------------- lane-dense output: (1, B), B on lanes ---------------------
    res = num - den                                                       # (B,1)
    # transpose-free sublane->lane move: diag-select then sublane reduce
    b_eye = (lax.broadcasted_iota(jnp.int32, (B, B), 0)
             == lax.broadcasted_iota(jnp.int32, (B, B), 1)).astype(jnp.float32)
    out_ref[...] = jnp.sum(res * b_eye, axis=0, keepdims=True)            # (1,B)


def crf_log_likelihood(h, labels, mask, trans, start_trans, end_trans):
    """log p(labels | h) per batch element, matching TorchCRF.CRF.forward.

    Assumes a prefix mask (mask[b, t] = t < seq_len[b]); TorchCRF itself relies on
    this via mask.sum(1) - 1.  Zero-length rows (all-false mask) are degenerate in
    both implementations and diverge slightly.
    # TODO(synk): assert the prefix-mask property when inputs are concrete.
    """
    B, S, L = h.shape
    h_f = h.astype(jnp.float32)                                           # (B,S,L) natural, no transpose
    y_i = labels.astype(jnp.int32)                                        # (B,S)
    m_f = mask.astype(jnp.float32)                                        # (B,S)
    lens_col = jnp.sum(mask.astype(jnp.int32), axis=1, keepdims=True)     # (B,1) - oriented for
                                                                          # the (S,B,1) compare
    trans_t = jnp.transpose(trans.astype(jnp.float32))                    # (L,L) hoisted transpose
    se = jnp.stack([start_trans.astype(jnp.float32),
                    end_trans.astype(jnp.float32)], axis=0)               # (2,L)

    out = pl.pallas_call(
        crf_llh_kernel,
        out_shape=jax.ShapeDtypeStruct((1, B), jnp.float32),
        in_specs=[
            pl.BlockSpec(memory_space=pltpu.MemorySpace.VMEM),   # h       (B,S,L)
            pl.BlockSpec(memory_space=pltpu.MemorySpace.VMEM),   # labels  (B,S)
            pl.BlockSpec(memory_space=pltpu.MemorySpace.VMEM),   # mask    (B,S)
            pl.BlockSpec(memory_space=pltpu.MemorySpace.VMEM),   # lengths (B,1)
            pl.BlockSpec(memory_space=pltpu.MemorySpace.VMEM),   # trans^T (L,L)
            pl.BlockSpec(memory_space=pltpu.MemorySpace.VMEM),   # start/end (2,L)
        ],
        out_specs=pl.BlockSpec(memory_space=pltpu.MemorySpace.VMEM),
    )(h_f, y_i, m_f, lens_col, trans_t, se)
    return out[0]


def crf_log_likelihood_ref(h, y, mask, trans, start, end):
    """Pure-JAX mirror of the PyTorch CRF.forward for verification."""
    B, S, L = h.shape
    maskf = mask.astype(jnp.float32)
    ar = jnp.arange(B)

    num = start[y[:, 0]]
    for t in range(S - 1):
        h_t = h[ar, t, y[:, t]]
        tr_t = trans[y[:, t], y[:, t + 1]]
        num = num + h_t * maskf[:, t] + tr_t * maskf[:, t + 1]
    last_idx = mask.astype(jnp.int32).sum(1) - 1
    last_lab = y[ar, last_idx]
    num = num + h[ar, -1, last_lab] * maskf[:, -1] + end[last_lab]

    score = start + h[:, 0]
    for t in range(1, S):
        st = score[:, :, None] + h[:, t][:, None, :] + trans[None]
        st = jax.scipy.special.logsumexp(st, axis=1)
        score = jnp.where(mask[:, t][:, None], st, score)
    score = score + end
    den = jax.scipy.special.logsumexp(score, axis=1)
    return num - den


if __name__ == "__main__":
    B, S, L = 2, 8, 5  # batch, seq_len, num_labels

    key = jax.random.PRNGKey(0)
    k_h, k_y, k_tr, k_st, k_en = jax.random.split(key, 5)

    # deterministic parameter init matching nn.init.uniform_(-0.1, 0.1), pad_idx=None
    trans = jax.random.uniform(k_tr, (L, L), jnp.float32, -0.1, 0.1)
    start_trans = jax.random.uniform(k_st, (L,), jnp.float32, -0.1, 0.1)
    end_trans = jax.random.uniform(k_en, (L,), jnp.float32, -0.1, 0.1)

    # example inputs
    h = jax.random.normal(k_h, (B, S, L), jnp.float32)
    labels = jax.random.randint(k_y, (B, S), 0, L, jnp.int32)
    seq_lens = jnp.array([S, 5], jnp.int32)                   # per-sequence valid lengths
    mask = jnp.arange(S)[None, :] < seq_lens[:, None]         # (B, S) bool prefix mask

    out = crf_log_likelihood(h, labels, mask, trans, start_trans, end_trans)
    out = jax.block_until_ready(out)

    ref = crf_log_likelihood_ref(h, labels, mask, trans, start_trans, end_trans)
    assert out.shape == (B,)
    assert jnp.allclose(out, ref, atol=1e-4, rtol=1e-4), (out, ref)

    print("KERNEL_OK")
</pallas_src>

<mosaic_0001>
module attributes {stable_mosaic.version = 11 : i64} {
  func.func @crf_llh_kernel(%arg0: memref<2x8x5xf32, #tpu.memory_space<vmem>>, %arg1: memref<2x8xi32, #tpu.memory_space<vmem>>, %arg2: memref<2x8xf32, #tpu.memory_space<vmem>>, %arg3: memref<2x1xi32, #tpu.memory_space<vmem>>, %arg4: memref<5x5xf32, #tpu.memory_space<vmem>>, %arg5: memref<2x5xf32, #tpu.memory_space<vmem>>, %arg6: memref<1x2xf32, #tpu.memory_space<vmem>>) attributes {dimension_semantics = [], scalar_prefetch = 0 : i64, scratch_operands = 0 : i64, tpu.core_type = #tpu.core_type<tc>} {
    %c0 = arith.constant 0 : index
    %c0_0 = arith.constant 0 : index
    %c0_1 = arith.constant 0 : index
    %0 = vector.load %arg0[%c0, %c0_0, %c0_1] : memref<2x8x5xf32, #tpu.memory_space<vmem>>, vector<2x8x5xf32>
    %c0_2 = arith.constant 0 : index
    %c0_3 = arith.constant 0 : index
    %1 = vector.load %arg1[%c0_2, %c0_3] : memref<2x8xi32, #tpu.memory_space<vmem>>, vector<2x8xi32>
    %c0_4 = arith.constant 0 : index
    %c0_5 = arith.constant 0 : index
    %2 = vector.load %arg2[%c0_4, %c0_5] : memref<2x8xf32, #tpu.memory_space<vmem>>, vector<2x8xf32>
    %c0_6 = arith.constant 0 : index
    %c0_7 = arith.constant 0 : index
    %3 = vector.load %arg3[%c0_6, %c0_7] : memref<2x1xi32, #tpu.memory_space<vmem>>, vector<2x1xi32>
    %c0_8 = arith.constant 0 : index
    %c0_9 = arith.constant 0 : index
    %4 = vector.load %arg4[%c0_8, %c0_9] : memref<5x5xf32, #tpu.memory_space<vmem>>, vector<5x5xf32>
    %c0_10 = arith.constant 0 : index
    %c0_11 = arith.constant 0 : index
    %5 = vector.load %arg5[%c0_10, %c0_11] : memref<2x5xf32, #tpu.memory_space<vmem>>, vector<2x5xf32>
    %6 = vector.extract_strided_slice %5 {offsets = [0, 0], sizes = [1, 5], strides = [1, 1]} : vector<2x5xf32> to vector<1x5xf32>
    %7 = vector.extract_strided_slice %5 {offsets = [1, 0], sizes = [1, 5], strides = [1, 1]} : vector<2x5xf32> to vector<1x5xf32>
    %8 = tpu.iota {dimensions = array<i32: 2>} : vector<2x8x5xi32>
    %9 = vector.shape_cast %1 : vector<2x8xi32> to vector<2x8x1xi32>
    %10 = vector.broadcast %9 : vector<2x8x1xi32> to vector<2x8x5xi32>
    %11 = arith.cmpi eq, %8, %10 : vector<2x8x5xi32>
    %12 = arith.extui %11 : vector<2x8x5xi1> to vector<2x8x5xi32>
    %13 = arith.sitofp %12 : vector<2x8x5xi32> to vector<2x8x5xf32>
    %14 = vector.shape_cast %2 : vector<2x8xf32> to vector<2x8x1xf32>
    %15 = vector.broadcast %14 : vector<2x8x1xf32> to vector<2x8x5xf32>
    %16 = arith.mulf %13, %15 : vector<2x8x5xf32>
    %17 = vector.extract_strided_slice %13 {offsets = [0, 0, 0], sizes = [2, 1, 5], strides = [1, 1, 1]} : vector<2x8x5xf32> to vector<2x1x5xf32>
    %18 = vector.shape_cast %17 : vector<2x1x5xf32> to vector<2x5xf32>
    %19 = vector.broadcast %6 : vector<1x5xf32> to vector<2x5xf32>
    %20 = arith.mulf %19, %18 : vector<2x5xf32>
    %cst = arith.constant dense<0.000000e+00> : vector<2xf32>
    %21 = vector.multi_reduction <add>, %20, %cst [1] : vector<2x5xf32> to vector<2xf32>
    %22 = vector.shape_cast %21 : vector<2xf32> to vector<2x1xf32>
    %23 = arith.mulf %0, %16 : vector<2x8x5xf32>
    %cst_12 = arith.constant dense<0.000000e+00> : vector<2x8xf32>
    %24 = vector.multi_reduction <add>, %23, %cst_12 [2] : vector<2x8x5xf32> to vector<2x8xf32>
    %cst_13 = arith.constant dense<0.000000e+00> : vector<2xf32>
    %25 = vector.multi_reduction <add>, %24, %cst_13 [1] : vector<2x8xf32> to vector<2xf32>
    %26 = vector.shape_cast %25 : vector<2xf32> to vector<2x1xf32>
    %27 = vector.extract_strided_slice %13 {offsets = [0, 0, 0], sizes = [2, 7, 5], strides = [1, 1, 1]} : vector<2x8x5xf32> to vector<2x7x5xf32>
    %28 = vector.extract_strided_slice %13 {offsets = [0, 1, 0], sizes = [2, 7, 5], strides = [1, 1, 1]} : vector<2x8x5xf32> to vector<2x7x5xf32>
    %29 = vector.extract_strided_slice %2 {offsets = [0, 1], sizes = [2, 7], strides = [1, 1]} : vector<2x8xf32> to vector<2x7xf32>
    %30 = vector.shape_cast %29 : vector<2x7xf32> to vector<2x7x1xf32>
    %31 = vector.shape_cast %4 : vector<5x5xf32> to vector<1x5x5xf32>
    %32 = vector.shape_cast %31 : vector<1x5x5xf32> to vector<1x5x5xf32>
    %33 = vector.broadcast %32 : vector<1x5x5xf32> to vector<2x5x5xf32>
    "tpu.trace_start"() <{level = 10 : i32, message = "bsl,bml->bsm"}> : () -> ()
    %cst_14 = arith.constant dense<0.000000e+00> : vector<2x7x5xf32>
    %34 = tpu.matmul %27, %33, %cst_14 {dimension_numbers = #tpu.dot_dimension_numbers<[2], [2], [1], [1], [0, 0, 0, 1, 1, 1], [0], [0]>} : vector<2x7x5xf32>, vector<2x5x5xf32>, vector<2x7x5xf32> -> vector<2x7x5xf32>
    "tpu.trace_stop"() : () -> ()
    %35 = arith.mulf %34, %28 : vector<2x7x5xf32>
    %36 = vector.broadcast %30 : vector<2x7x1xf32> to vector<2x7x5xf32>
    %37 = arith.mulf %35, %36 : vector<2x7x5xf32>
    %cst_15 = arith.constant dense<0.000000e+00> : vector<2x7xf32>
    %38 = vector.multi_reduction <add>, %37, %cst_15 [2] : vector<2x7x5xf32> to vector<2x7xf32>
    %cst_16 = arith.constant dense<0.000000e+00> : vector<2xf32>
    %39 = vector.multi_reduction <add>, %38, %cst_16 [1] : vector<2x7xf32> to vector<2xf32>
    %40 = vector.shape_cast %39 : vector<2xf32> to vector<2x1xf32>
    %cst_17 = arith.constant dense<0.000000e+00> : vector<2x5xf32>
    %41 = vector.multi_reduction <add>, %16, %cst_17 [1] : vector<2x8x5xf32> to vector<2x5xf32>
    %42 = vector.broadcast %30 : vector<2x7x1xf32> to vector<2x7x5xf32>
    %43 = arith.mulf %27, %42 : vector<2x7x5xf32>
    %cst_18 = arith.constant dense<0.000000e+00> : vector<2x5xf32>
    %44 = vector.multi_reduction <add>, %43, %cst_18 [1] : vector<2x7x5xf32> to vector<2x5xf32>
    %45 = arith.subf %41, %44 : vector<2x5xf32>
    %46 = vector.broadcast %7 : vector<1x5xf32> to vector<2x5xf32>
    %47 = arith.mulf %46, %45 : vector<2x5xf32>
    %cst_19 = arith.constant dense<0.000000e+00> : vector<2xf32>
    %48 = vector.multi_reduction <add>, %47, %cst_19 [1] : vector<2x5xf32> to vector<2xf32>
    %49 = vector.shape_cast %48 : vector<2xf32> to vector<2x1xf32>
    %50 = arith.addf %22, %26 : vector<2x1xf32>
    %51 = arith.addf %50, %40 : vector<2x1xf32>
    %52 = arith.addf %51, %49 : vector<2x1xf32>
    %53 = tpu.iota {dimensions = array<i32: 0>} : vector<8x2x1xi32>
    %54 = vector.shape_cast %3 : vector<2x1xi32> to vector<1x2x1xi32>
    %55 = vector.broadcast %54 : vector<1x2x1xi32> to vector<8x2x1xi32>
    %56 = arith.cmpi slt, %53, %55 : vector<8x2x1xi32>
    %57 = vector.shape_cast %0 : vector<2x8x5xf32> to vector<2x8x5x1xf32>
    %58 = vector.extract_strided_slice %0 {offsets = [0, 0, 0], sizes = [2, 1, 5], strides = [1, 1, 1]} : vector<2x8x5xf32> to vector<2x1x5xf32>
    %59 = vector.shape_cast %58 : vector<2x1x5xf32> to vector<2x5xf32>
    %60 = vector.broadcast %6 : vector<1x5xf32> to vector<2x5xf32>
    %61 = arith.addf %60, %59 : vector<2x5xf32>
    %62 = vector.shape_cast %61 : vector<2x5xf32> to vector<2x1x5xf32>
    %63 = vector.extract_strided_slice %57 {offsets = [0, 1, 0, 0], sizes = [2, 1, 5, 1], strides = [1, 1, 1, 1]} : vector<2x8x5x1xf32> to vector<2x1x5x1xf32>
    %64 = vector.shape_cast %63 : vector<2x1x5x1xf32> to vector<2x5x1xf32>
    %65 = vector.broadcast %62 : vector<2x1x5xf32> to vector<2x5x5xf32>
    %66 = vector.broadcast %64 : vector<2x5x1xf32> to vector<2x5x5xf32>
    %67 = arith.addf %65, %66 : vector<2x5x5xf32>
    %68 = vector.shape_cast %4 : vector<5x5xf32> to vector<1x5x5xf32>
    %69 = vector.broadcast %68 : vector<1x5x5xf32> to vector<2x5x5xf32>
    %70 = arith.addf %67, %69 : vector<2x5x5xf32>
    %cst_20 = arith.constant dense<0xFF800000> : vector<2x5xf32>
    %71 = vector.multi_reduction <maximumf>, %70, %cst_20 [2] : vector<2x5x5xf32> to vector<2x5xf32>
    %72 = vector.shape_cast %71 : vector<2x5xf32> to vector<2x5x1xf32>
    %73 = vector.broadcast %72 : vector<2x5x1xf32> to vector<2x5x5xf32>
    %74 = arith.subf %70, %73 : vector<2x5x5xf32>
    %75 = math.exp %74 : vector<2x5x5xf32>
    %cst_21 = arith.constant dense<0.000000e+00> : vector<2x5xf32>
    %76 = vector.multi_reduction <add>, %75, %cst_21 [2] : vector<2x5x5xf32> to vector<2x5xf32>
    %77 = vector.shape_cast %76 : vector<2x5xf32> to vector<2x5x1xf32>
    %78 = math.log %77 : vector<2x5x1xf32>
    %79 = arith.addf %78, %72 : vector<2x5x1xf32>
    %80 = vector.extract_strided_slice %56 {offsets = [1, 0, 0], sizes = [1, 2, 1], strides = [1, 1, 1]} : vector<8x2x1xi1> to vector<1x2x1xi1>
    %81 = vector.shape_cast %80 : vector<1x2x1xi1> to vector<2x1xi1>
    %82 = vector.shape_cast %79 : vector<2x5x1xf32> to vector<2x5xf32>
    %83 = vector.shape_cast %81 : vector<2x1xi1> to vector<2x1xi1>
    %84 = vector.broadcast %83 : vector<2x1xi1> to vector<2x5xi1>
    %85 = arith.select %84, %82, %61 : vector<2x5xi1>, vector<2x5xf32>
    %86 = vector.shape_cast %85 : vector<2x5xf32> to vector<2x1x5xf32>
    %87 = vector.extract_strided_slice %57 {offsets = [0, 2, 0, 0], sizes = [2, 1, 5, 1], strides = [1, 1, 1, 1]} : vector<2x8x5x1xf32> to vector<2x1x5x1xf32>
    %88 = vector.shape_cast %87 : vector<2x1x5x1xf32> to vector<2x5x1xf32>
    %89 = vector.broadcast %86 : vector<2x1x5xf32> to vector<2x5x5xf32>
    %90 = vector.broadcast %88 : vector<2x5x1xf32> to vector<2x5x5xf32>
    %91 = arith.addf %89, %90 : vector<2x5x5xf32>
    %92 = vector.shape_cast %4 : vector<5x5xf32> to vector<1x5x5xf32>
    %93 = vector.broadcast %92 : vector<1x5x5xf32> to vector<2x5x5xf32>
    %94 = arith.addf %91, %93 : vector<2x5x5xf32>
    %cst_22 = arith.constant dense<0xFF800000> : vector<2x5xf32>
    %95 = vector.multi_reduction <maximumf>, %94, %cst_22 [2] : vector<2x5x5xf32> to vector<2x5xf32>
    %96 = vector.shape_cast %95 : vector<2x5xf32> to vector<2x5x1xf32>
    %97 = vector.broadcast %96 : vector<2x5x1xf32> to vector<2x5x5xf32>
    %98 = arith.subf %94, %97 : vector<2x5x5xf32>
    %99 = math.exp %98 : vector<2x5x5xf32>
    %cst_23 = arith.constant dense<0.000000e+00> : vector<2x5xf32>
    %100 = vector.multi_reduction <add>, %99, %cst_23 [2] : vector<2x5x5xf32> to vector<2x5xf32>
    %101 = vector.shape_cast %100 : vector<2x5xf32> to vector<2x5x1xf32>
    %102 = math.log %101 : vector<2x5x1xf32>
    %103 = arith.addf %102, %96 : vector<2x5x1xf32>
    %104 = vector.extract_strided_slice %56 {offsets = [2, 0, 0], sizes = [1, 2, 1], strides = [1, 1, 1]} : vector<8x2x1xi1> to vector<1x2x1xi1>
    %105 = vector.shape_cast %104 : vector<1x2x1xi1> to vector<2x1xi1>
    %106 = vector.shape_cast %103 : vector<2x5x1xf32> to vector<2x5xf32>
    %107 = vector.shape_cast %105 : vector<2x1xi1> to vector<2x1xi1>
    %108 = vector.broadcast %107 : vector<2x1xi1> to vector<2x5xi1>
    %109 = arith.select %108, %106, %85 : vector<2x5xi1>, vector<2x5xf32>
    %110 = vector.shape_cast %109 : vector<2x5xf32> to vector<2x1x5xf32>
    %111 = vector.extract_strided_slice %57 {offsets = [0, 3, 0, 0], sizes = [2, 1, 5, 1], strides = [1, 1, 1, 1]} : vector<2x8x5x1xf32> to vector<2x1x5x1xf32>
    %112 = vector.shape_cast %111 : vector<2x1x5x1xf32> to vector<2x5x1xf32>
    %113 = vector.broadcast %110 : vector<2x1x5xf32> to vector<2x5x5xf32>
    %114 = vector.broadcast %112 : vector<2x5x1xf32> to vector<2x5x5xf32>
    %115 = arith.addf %113, %114 : vector<2x5x5xf32>
    %116 = vector.shape_cast %4 : vector<5x5xf32> to vector<1x5x5xf32>
    %117 = vector.broadcast %116 : vector<1x5x5xf32> to vector<2x5x5xf32>
    %118 = arith.addf %115, %117 : vector<2x5x5xf32>
    %cst_24 = arith.constant dense<0xFF800000> : vector<2x5xf32>
    %119 = vector.multi_reduction <maximumf>, %118, %cst_24 [2] : vector<2x5x5xf32> to vector<2x5xf32>
    %120 = vector.shape_cast %119 : vector<2x5xf32> to vector<2x5x1xf32>
    %121 = vector.broadcast %120 : vector<2x5x1xf32> to vector<2x5x5xf32>
    %122 = arith.subf %118, %121 : vector<2x5x5xf32>
    %123 = math.exp %122 : vector<2x5x5xf32>
    %cst_25 = arith.constant dense<0.000000e+00> : vector<2x5xf32>
    %124 = vector.multi_reduction <add>, %123, %cst_25 [2] : vector<2x5x5xf32> to vector<2x5xf32>
    %125 = vector.shape_cast %124 : vector<2x5xf32> to vector<2x5x1xf32>
    %126 = math.log %125 : vector<2x5x1xf32>
    %127 = arith.addf %126, %120 : vector<2x5x1xf32>
    %128 = vector.extract_strided_slice %56 {offsets = [3, 0, 0], sizes = [1, 2, 1], strides = [1, 1, 1]} : vector<8x2x1xi1> to vector<1x2x1xi1>
    %129 = vector.shape_cast %128 : vector<1x2x1xi1> to vector<2x1xi1>
    %130 = vector.shape_cast %127 : vector<2x5x1xf32> to vector<2x5xf32>
    %131 = vector.shape_cast %129 : vector<2x1xi1> to vector<2x1xi1>
    %132 = vector.broadcast %131 : vector<2x1xi1> to vector<2x5xi1>
    %133 = arith.select %132, %130, %109 : vector<2x5xi1>, vector<2x5xf32>
    %134 = vector.shape_cast %133 : vector<2x5xf32> to vector<2x1x5xf32>
    %135 = vector.extract_strided_slice %57 {offsets = [0, 4, 0, 0], sizes = [2, 1, 5, 1], strides = [1, 1, 1, 1]} : vector<2x8x5x1xf32> to vector<2x1x5x1xf32>
    %136 = vector.shape_cast %135 : vector<2x1x5x1xf32> to vector<2x5x1xf32>
    %137 = vector.broadcast %134 : vector<2x1x5xf32> to vector<2x5x5xf32>
    %138 = vector.broadcast %136 : vector<2x5x1xf32> to vector<2x5x5xf32>
    %139 = arith.addf %137, %138 : vector<2x5x5xf32>
    %140 = vector.shape_cast %4 : vector<5x5xf32> to vector<1x5x5xf32>
    %141 = vector.broadcast %140 : vector<1x5x5xf32> to vector<2x5x5xf32>
    %142 = arith.addf %139, %141 : vector<2x5x5xf32>
    %cst_26 = arith.constant dense<0xFF800000> : vector<2x5xf32>
    %143 = vector.multi_reduction <maximumf>, %142, %cst_26 [2] : vector<2x5x5xf32> to vector<2x5xf32>
    %144 = vector.shape_cast %143 : vector<2x5xf32> to vector<2x5x1xf32>
    %145 = vector.broadcast %144 : vector<2x5x1xf32> to vector<2x5x5xf32>
    %146 = arith.subf %142, %145 : vector<2x5x5xf32>
    %147 = math.exp %146 : vector<2x5x5xf32>
    %cst_27 = arith.constant dense<0.000000e+00> : vector<2x5xf32>
    %148 = vector.multi_reduction <add>, %147, %cst_27 [2] : vector<2x5x5xf32> to vector<2x5xf32>
    %149 = vector.shape_cast %148 : vector<2x5xf32> to vector<2x5x1xf32>
    %150 = math.log %149 : vector<2x5x1xf32>
    %151 = arith.addf %150, %144 : vector<2x5x1xf32>
    %152 = vector.extract_strided_slice %56 {offsets = [4, 0, 0], sizes = [1, 2, 1], strides = [1, 1, 1]} : vector<8x2x1xi1> to vector<1x2x1xi1>
    %153 = vector.shape_cast %152 : vector<1x2x1xi1> to vector<2x1xi1>
    %154 = vector.shape_cast %151 : vector<2x5x1xf32> to vector<2x5xf32>
    %155 = vector.shape_cast %153 : vector<2x1xi1> to vector<2x1xi1>
    %156 = vector.broadcast %155 : vector<2x1xi1> to vector<2x5xi1>
    %157 = arith.select %156, %154, %133 : vector<2x5xi1>, vector<2x5xf32>
    %158 = vector.shape_cast %157 : vector<2x5xf32> to vector<2x1x5xf32>
    %159 = vector.extract_strided_slice %57 {offsets = [0, 5, 0, 0], sizes = [2, 1, 5, 1], strides = [1, 1, 1, 1]} : vector<2x8x5x1xf32> to vector<2x1x5x1xf32>
    %160 = vector.shape_cast %159 : vector<2x1x5x1xf32> to vector<2x5x1xf32>
    %161 = vector.broadcast %158 : vector<2x1x5xf32> to vector<2x5x5xf32>
    %162 = vector.broadcast %160 : vector<2x5x1xf32> to vector<2x5x5xf32>
    %163 = arith.addf %161, %162 : vector<2x5x5xf32>
    %164 = vector.shape_cast %4 : vector<5x5xf32> to vector<1x5x5xf32>
    %165 = vector.broadcast %164 : vector<1x5x5xf32> to vector<2x5x5xf32>
    %166 = arith.addf %163, %165 : vector<2x5x5xf32>
    %cst_28 = arith.constant dense<0xFF800000> : vector<2x5xf32>
    %167 = vector.multi_reduction <maximumf>, %166, %cst_28 [2] : vector<2x5x5xf32> to vector<2x5xf32>
    %168 = vector.shape_cast %167 : vector<2x5xf32> to vector<2x5x1xf32>
    %169 = vector.broadcast %168 : vector<2x5x1xf32> to vector<2x5x5xf32>
    %170 = arith.subf %166, %169 : vector<2x5x5xf32>
    %171 = math.exp %170 : vector<2x5x5xf32>
    %cst_29 = arith.constant dense<0.000000e+00> : vector<2x5xf32>
    %172 = vector.multi_reduction <add>, %171, %cst_29 [2] : vector<2x5x5xf32> to vector<2x5xf32>
    %173 = vector.shape_cast %172 : vector<2x5xf32> to vector<2x5x1xf32>
    %174 = math.log %173 : vector<2x5x1xf32>
    %175 = arith.addf %174, %168 : vector<2x5x1xf32>
    %176 = vector.extract_strided_slice %56 {offsets = [5, 0, 0], sizes = [1, 2, 1], strides = [1, 1, 1]} : vector<8x2x1xi1> to vector<1x2x1xi1>
    %177 = vector.shape_cast %176 : vector<1x2x1xi1> to vector<2x1xi1>
    %178 = vector.shape_cast %175 : vector<2x5x1xf32> to vector<2x5xf32>
    %179 = vector.shape_cast %177 : vector<2x1xi1> to vector<2x1xi1>
    %180 = vector.broadcast %179 : vector<2x1xi1> to vector<2x5xi1>
    %181 = arith.select %180, %178, %157 : vector<2x5xi1>, vector<2x5xf32>
    %182 = vector.shape_cast %181 : vector<2x5xf32> to vector<2x1x5xf32>
    %183 = vector.extract_strided_slice %57 {offsets = [0, 6, 0, 0], sizes = [2, 1, 5, 1], strides = [1, 1, 1, 1]} : vector<2x8x5x1xf32> to vector<2x1x5x1xf32>
    %184 = vector.shape_cast %183 : vector<2x1x5x1xf32> to vector<2x5x1xf32>
    %185 = vector.broadcast %182 : vector<2x1x5xf32> to vector<2x5x5xf32>
    %186 = vector.broadcast %184 : vector<2x5x1xf32> to vector<2x5x5xf32>
    %187 = arith.addf %185, %186 : vector<2x5x5xf32>
    %188 = vector.shape_cast %4 : vector<5x5xf32> to vector<1x5x5xf32>
    %189 = vector.broadcast %188 : vector<1x5x5xf32> to vector<2x5x5xf32>
    %190 = arith.addf %187, %189 : vector<2x5x5xf32>
    %cst_30 = arith.constant dense<0xFF800000> : vector<2x5xf32>
    %191 = vector.multi_reduction <maximumf>, %190, %cst_30 [2] : vector<2x5x5xf32> to vector<2x5xf32>
    %192 = vector.shape_cast %191 : vector<2x5xf32> to vector<2x5x1xf32>
    %193 = vector.broadcast %192 : vector<2x5x1xf32> to vector<2x5x5xf32>
    %194 = arith.subf %190, %193 : vector<2x5x5xf32>
    %195 = math.exp %194 : vector<2x5x5xf32>
    %cst_31 = arith.constant dense<0.000000e+00> : vector<2x5xf32>
    %196 = vector.multi_reduction <add>, %195, %cst_31 [2] : vector<2x5x5xf32> to vector<2x5xf32>
    %197 = vector.shape_cast %196 : vector<2x5xf32> to vector<2x5x1xf32>
    %198 = math.log %197 : vector<2x5x1xf32>
    %199 = arith.addf %198, %192 : vector<2x5x1xf32>
    %200 = vector.extract_strided_slice %56 {offsets = [6, 0, 0], sizes = [1, 2, 1], strides = [1, 1, 1]} : vector<8x2x1xi1> to vector<1x2x1xi1>
    %201 = vector.shape_cast %200 : vector<1x2x1xi1> to vector<2x1xi1>
    %202 = vector.shape_cast %199 : vector<2x5x1xf32> to vector<2x5xf32>
    %203 = vector.shape_cast %201 : vector<2x1xi1> to vector<2x1xi1>
    %204 = vector.broadcast %203 : vector<2x1xi1> to vector<2x5xi1>
    %205 = arith.select %204, %202, %181 : vector<2x5xi1>, vector<2x5xf32>
    %206 = vector.shape_cast %205 : vector<2x5xf32> to vector<2x1x5xf32>
    %207 = vector.extract_strided_slice %57 {offsets = [0, 7, 0, 0], sizes = [2, 1, 5, 1], strides = [1, 1, 1, 1]} : vector<2x8x5x1xf32> to vector<2x1x5x1xf32>
    %208 = vector.shape_cast %207 : vector<2x1x5x1xf32> to vector<2x5x1xf32>
    %209 = vector.broadcast %206 : vector<2x1x5xf32> to vector<2x5x5xf32>
    %210 = vector.broadcast %208 : vector<2x5x1xf32> to vector<2x5x5xf32>
    %211 = arith.addf %209, %210 : vector<2x5x5xf32>
    %212 = vector.shape_cast %4 : vector<5x5xf32> to vector<1x5x5xf32>
    %213 = vector.broadcast %212 : vector<1x5x5xf32> to vector<2x5x5xf32>
    %214 = arith.addf %211, %213 : vector<2x5x5xf32>
    %cst_32 = arith.constant dense<0xFF800000> : vector<2x5xf32>
    %215 = vector.multi_reduction <maximumf>, %214, %cst_32 [2] : vector<2x5x5xf32> to vector<2x5xf32>
    %216 = vector.shape_cast %215 : vector<2x5xf32> to vector<2x5x1xf32>
    %217 = vector.broadcast %216 : vector<2x5x1xf32> to vector<2x5x5xf32>
    %218 = arith.subf %214, %217 : vector<2x5x5xf32>
    %219 = math.exp %218 : vector<2x5x5xf32>
    %cst_33 = arith.constant dense<0.000000e+00> : vector<2x5xf32>
    %220 = vector.multi_reduction <add>, %219, %cst_33 [2] : vector<2x5x5xf32> to vector<2x5xf32>
    %221 = vector.shape_cast %220 : vector<2x5xf32> to vector<2x5x1xf32>
    %222 = math.log %221 : vector<2x5x1xf32>
    %223 = arith.addf %222, %216 : vector<2x5x1xf32>
    %224 = vector.extract_strided_slice %56 {offsets = [7, 0, 0], sizes = [1, 2, 1], strides = [1, 1, 1]} : vector<8x2x1xi1> to vector<1x2x1xi1>
    %225 = vector.shape_cast %224 : vector<1x2x1xi1> to vector<2x1xi1>
    %226 = vector.shape_cast %223 : vector<2x5x1xf32> to vector<2x5xf32>
    %227 = vector.shape_cast %225 : vector<2x1xi1> to vector<2x1xi1>
    %228 = vector.broadcast %227 : vector<2x1xi1> to vector<2x5xi1>
    %229 = arith.select %228, %226, %205 : vector<2x5xi1>, vector<2x5xf32>
    %230 = vector.broadcast %7 : vector<1x5xf32> to vector<2x5xf32>
    %231 = arith.addf %229, %230 : vector<2x5xf32>
    %cst_34 = arith.constant dense<0xFF800000> : vector<2xf32>
    %232 = vector.multi_reduction <maximumf>, %231, %cst_34 [1] : vector<2x5xf32> to vector<2xf32>
    %233 = vector.shape_cast %232 : vector<2xf32> to vector<2x1xf32>
    %234 = vector.broadcast %233 : vector<2x1xf32> to vector<2x5xf32>
    %235 = arith.subf %231, %234 : vector<2x5xf32>
    %236 = math.exp %235 : vector<2x5xf32>
    %cst_35 = arith.constant dense<0.000000e+00> : vector<2xf32>
    %237 = vector.multi_reduction <add>, %236, %cst_35 [1] : vector<2x5xf32> to vector<2xf32>
    %238 = vector.shape_cast %237 : vector<2xf32> to vector<2x1xf32>
    %239 = math.log %238 : vector<2x1xf32>
    %240 = arith.addf %239, %233 : vector<2x1xf32>
    %241 = arith.subf %52, %240 : vector<2x1xf32>
    %242 = tpu.iota {dimensions = array<i32: 0>} : vector<2x2xi32>
    %243 = tpu.iota {dimensions = array<i32: 1>} : vector<2x2xi32>
    %244 = arith.cmpi eq, %242, %243 : vector<2x2xi32>
    %245 = arith.extui %244 : vector<2x2xi1> to vector<2x2xi32>
    %246 = arith.sitofp %245 : vector<2x2xi32> to vector<2x2xf32>
    %247 = vector.broadcast %241 : vector<2x1xf32> to vector<2x2xf32>
    %248 = arith.mulf %247, %246 : vector<2x2xf32>
    %cst_36 = arith.constant dense<0.000000e+00> : vector<2xf32>
    %249 = vector.multi_reduction <add>, %248, %cst_36 [0] : vector<2x2xf32> to vector<2xf32>
    %250 = vector.shape_cast %249 : vector<2xf32> to vector<1x2xf32>
    %c0_37 = arith.constant 0 : index
    %c0_38 = arith.constant 0 : index
    %251 = vector.load %arg6[%c0_37, %c0_38] : memref<1x2xf32, #tpu.memory_space<vmem>>, vector<1x2xf32>
    tpu.vector_store %arg6[%c0_37, %c0_38], %250 {strides = array<i32>} : memref<1x2xf32, #tpu.memory_space<vmem>>, vector<1x2xf32>,
    return
  }
}

</mosaic_0001>

<bundles_post_ra>
// kernel: tpu_custom_call.1
= control target key start
LH: loop header
LB: loop body
LE: loop exit
PB: predicated region body
PF: predicated region fallthrough
CT: control target
= control target key end

     0   :  { %v31_v0 = vlaneseq  ;;  %s1082_s0 = inlined_call_operand.vmem [shape: f32[2,8,5], index: 0, kind: input, shape index: {}]   ;;  %s1083_s1 = inlined_call_operand.vmem [shape: s32[2,8], index: 1, kind: input, shape index: {}]   ;;  %s1084_s2 = inlined_call_operand.vmem [shape: f32[2,8], index: 2, kind: input, shape index: {}]   ;;  %s1085_s3 = inlined_call_operand.vmem [shape: s32[2,1], index: 3, kind: input, shape index: {}]   ;;  %s1086_s4 = inlined_call_operand.vmem [shape: f32[5,5], index: 4, kind: input, shape index: {}]   ;;  %s1087_s5 = inlined_call_operand.vmem [shape: f32[2,5], index: 5, kind: input, shape index: {}]   ;;  %s1088_s6 = inlined_call_operand.hbm [shape: f32[1,2], index: 6, kind: output, shape index: {}]  }
   0x1   :  { %11 = vsyncpa [#allocation3], 0  ;;  %v869_v2 = vld [vmem:[%s1082_s0] sm:$0xff]  ;;  %v876_v4 = vld [vmem:[%s1082_s0 + $0x8] sm:$0xff]  ;;  %vm73_vm0 = vcmask 1041409   ;;  %vm349_vm1 = vcmask 36864  }
   0x2   :  { %v862_v1 = vshrl.u32 %v31_v0, 7  ;;  %v235_v3 = vperm.slane %v869_v2, 1  ;;  %v284_v5 = vperm.slane %v876_v4, 1  ;;  %v882_v6 = vld [vmem:[%s1087_s5] sm:$0x3]  ;;  %v335_v7 = vrot.slane %v876_v4, 7 }
   0x3   :  { %v69_v8 = vperm.slane %v882_v6, 0  ;;  %v893_v13 = vld [vmem:[%s1086_s4] sm:$0x1f]  ;;  %v242_v24 = vperm.slane %v869_v2, 2  ;;  %v823_v25 = vmov 0   ;;  %v291_v37 = vperm.slane %v876_v4, 2 }
   0x4   :  { %718 = vset.pattern.permute.xlu0 %v862_v1  ;;  %720 = vset.pattern.permute.xlu1 %v862_v1  ;;  %v336_v9 = vsel %vm73_vm0, %v335_v7, %v869_v2  ;;  %v902_v23 = vld [vmem:[%s1085_s3] sm:$0x3]  ;;  %v914_v43 = vand.u32 127, %v31_v0  ;;  %vm83_vm12 = vcmask 39936   ;;  %s699_s9 = sshll.u32 %s1088_s6, 4  ;;  %s700_s9 = int_to_ptr.hbm [resolvable:$true] %s699_s9 }
   0x5   :  { %721 = vset.pattern.permute.xlu2 %v862_v1  ;;  %v338_v10 = vadd.f32 %v336_v9, %v69_v8  ;;  %vm228_vm2 = vcmp.gt.s32.totalorder %v902_v23, 1  ;;  %vm229_vm4 = vcmp.gt.s32.totalorder %v902_v23, 2  ;;  %vm230_vm6 = vcmp.gt.s32.totalorder %v902_v23, 3  ;;  %710 = vmatpush.xpose.msk.msra.mxu0 %vm83_vm12, %v893_v13 }
   0x6   :  { %v374_v26 = vsel %vm228_vm2, 1, %v823_v25  ;;  %vm231_vm8 = vcmp.gt.s32.totalorder %v902_v23, 4  ;;  %vm232_vm10 = vcmp.gt.s32.totalorder %v902_v23, 5  ;;  %712 = vmatpush.xpose.msk.msra.mxu1 %vm83_vm12, %v893_v13  ;;  %vm233_vm13 = vcmp.gt.s32.totalorder %v902_v23, 6 }
   0x7   :  { %v341_v11 = vperm.slane %v338_v10, 0  ;;  %v340_v15 = vrot.slane %v338_v10, 1 }
   0x9   :  { %v342_v18 = vperm.slane %v340_v15, 0 }
   0xc   :  { %240 = vperm.xlu0 %718, %v235_v3  }
  0x14   :  { %289 = vperm.xlu0 %718, %v284_v5  }
  0x1c   :  { %719 = vset.pattern.permute.xlu0 %v823_v25 }
  0x1d   :  { %376 = vperm.xlu0 %719, %v374_v26  }
  0x25   :  { %723 = vset.pattern.permute.xlu0 %v862_v1 }
  0x7e   :  { %v241_v12 = vpop.permute.xlu0 %240 }
  0x7f   :  { %v345_v14 = vadd.f32 %v341_v11, %v241_v12 }
  0x81   :  { %v347_v16 = vadd.f32 %v345_v14, %v893_v13 }
  0x83   :  { %v350_v17 = vsel %vm349_vm1, %v347_v16, -inf }
  0x84   :  { %351 = vmax.xlane.f32.xlu1 %v350_v17  ;;  %v298_v17 = vperm.slane %v876_v4, 3 }
  0x86   :  { %v290_v19 = vpop.permute.xlu0 %289 }
  0x87   :  { %v346_v20 = vadd.f32 %v342_v18, %v290_v19 }
  0x89   :  { %v348_v21 = vadd.f32 %v346_v20, %v893_v13 }
  0x8b   :  { %v353_v22 = vsel %vm349_vm1, %v348_v21, -inf }
  0x8c   :  { %354 = vmax.xlane.f32.xlu1 %v353_v22 }
  0x8f   :  { %v377_v46 = vpop.permute.xlu0 %376 }
  0x90   :  { %vm378_vm3 = vcmp.eq.s32.totalorder %v377_v46, 1 }
  0xa5   :  { %247 = vperm.xlu1 %720, %v242_v24  }
  0xf7   :  { %v352_v27 = vpop.xlane.xlu1 %351 }
  0xf8   :  { %v356_v28 = vsub.f32 %v347_v16, %v352_v27  ;;  %v249_v16 = vperm.slane %v869_v2, 3 }
  0xfa   :  { %v358_v29 = vmul.f32 1.442695, %v356_v28 }
  0xfc   :  { %737 = vpow2.f32 %v358_v29 }
  0xff   :  { %v355_v30 = vpop.xlane.xlu1 %354 }
 0x100   :  { %v357_v31 = vsub.f32 %v348_v21, %v355_v30 }
 0x102   :  { %v738_v32 = vpop.eup %737  ;;  %v360_v33 = vmul.f32 1.442695, %v357_v31 }
 0x103   :  { %v362_v34 = vsel %vm349_vm1, %v738_v32, 0.0 }
 0x104   :  { %739 = vpow2.f32 %v360_v33  ;;  %363 = vadd.xlane.f32.xlu2 %v362_v34 }
 0x10a   :  { %v740_v35 = vpop.eup %739 }
 0x10b   :  { %v365_v36 = vsel %vm349_vm1, %v740_v35, 0.0 }
 0x10c   :  { %366 = vadd.xlane.f32.xlu2 %v365_v36 }
 0x117   :  { %v248_v52 = vpop.permute.xlu1 %247 }
 0x124   :  { %296 = vperm.xlu2 %721, %v291_v37  }
 0x12c   :  { %722 = vset.pattern.permute.xlu2 %v823_v25 }
 0x177   :  { %v364_v38 = vpop.xlane.xlu2 %363 }
 0x178   :  { %741 = vlog2.f32 %v364_v38 }
 0x17e   :  { %v742_v40 = vpop.eup %741 }
 0x17f   :  { %v367_v39 = vpop.xlane.xlu2 %366  ;;  %v369_v41 = vmul.f32 0.6931472, %v742_v40 }
 0x180   :  { %743 = vlog2.f32 %v367_v39 }
 0x181   :  { %v372_v44 = vadd.f32 %v369_v41, %v352_v27 }
 0x183   :  { %v381_v48 = vperm.slane %v372_v44, %v914_v43 }
 0x186   :  { %v744_v42 = vpop.eup %743 }
 0x187   :  { %v371_v45 = vmul.f32 0.6931472, %v744_v42  ;;  %v297_v55 = vpop.permute.xlu2 %296 }
 0x189   :  { %v373_v47 = vadd.f32 %v371_v45, %v355_v30  ;;  %v466_v45 = vsel %vm230_vm6, 1, %v823_v25  ;;  %vm96_vm6 = vcmask 58368  }
 0x18b   :  { %v382_v49 = vperm.slane %v373_v47, %v914_v43 }
 0x18d   :  { %v383_v50 = vsel %vm73_vm0, %v382_v49, %v381_v48 }
 0x18e   :  { %v385_v51 = vsel %vm378_vm3, %v383_v50, %v338_v10  ;;  %v420_v10 = vsel %vm229_vm4, 1, %v823_v25  ;;  %vm234_vm3 = vcmp.gt.s32.totalorder %v902_v23, 7 }
 0x18f   :  { %v388_v53 = vperm.slane %v385_v51, 0  ;;  %v387_v54 = vrot.slane %v385_v51, 1 }
 0x191   :  { %v392_v56 = vadd.f32 %v388_v53, %v248_v52  ;;  %v389_v57 = vperm.slane %v387_v54, 0 }
 0x193   :  { %v393_v58 = vadd.f32 %v389_v57, %v297_v55  ;;  %v394_v59 = vadd.f32 %v392_v56, %v893_v13  ;;  %v305_v56 = vperm.slane %v876_v4, 4  ;;  %v256_v57 = vperm.slane %v869_v2, 4 }
 0x195   :  { %v396_v60 = vsel %vm349_vm1, %v394_v59, -inf  ;;  %v395_v61 = vadd.f32 %v393_v58, %v893_v13 }
 0x196   :  { %397 = vmax.xlane.f32.xlu0 %v396_v60 }
 0x197   :  { %v399_v62 = vsel %vm349_vm1, %v395_v61, -inf }
 0x198   :  { %400 = vmax.xlane.f32.xlu2 %v399_v62 }
 0x1b0   :  { %422 = vperm.xlu2 %722, %v420_v10  }
 0x1b8   :  { %725 = vset.pattern.permute.xlu2 %v862_v1 }
 0x209   :  { %v398_v63 = vpop.xlane.xlu0 %397 }
 0x20a   :  { %v402_v0 = vsub.f32 %v394_v59, %v398_v63 }
 0x20b   :  { %v401_v3 = vpop.xlane.xlu2 %400 }
 0x20c   :  { %v404_v5 = vmul.f32 1.442695, %v402_v0  ;;  %v403_v7 = vsub.f32 %v395_v61, %v401_v3 }
 0x20e   :  { %745 = vpow2.f32 %v404_v5  ;;  %v406_v9 = vmul.f32 1.442695, %v403_v7 }
 0x210   :  { %747 = vpow2.f32 %v406_v9 }
 0x213   :  { %v423_v27 = vpop.permute.xlu2 %422 }
 0x214   :  { %v746_v11 = vpop.eup %745  ;;  %vm424_vm5 = vcmp.eq.s32.totalorder %v423_v27, 1 }
 0x215   :  { %v408_v12 = vsel %vm349_vm1, %v746_v11, 0.0 }
 0x216   :  { %v748_v14 = vpop.eup %747  ;;  %409 = vadd.xlane.f32.xlu1 %v408_v12 }
 0x217   :  { %v411_v15 = vsel %vm349_vm1, %v748_v14, 0.0 }
 0x218   :  { %412 = vadd.xlane.f32.xlu0 %v411_v15 }
 0x22c   :  { %254 = vperm.xlu0 %723, %v249_v16  }
 0x22f   :  { %303 = vperm.xlu1 %720, %v298_v17  }
 0x237   :  { %724 = vset.pattern.permute.xlu1 %v823_v25 }
 0x289   :  { %v410_v18 = vpop.xlane.xlu1 %409 }
 0x28a   :  { %749 = vlog2.f32 %v410_v18 }
 0x28b   :  { %v413_v19 = vpop.xlane.xlu0 %412 }
 0x28c   :  { %751 = vlog2.f32 %v413_v19 }
 0x290   :  { %v750_v20 = vpop.eup %749 }
 0x291   :  { %v415_v21 = vmul.f32 0.6931472, %v750_v20 }
 0x292   :  { %v752_v22 = vpop.eup %751 }
 0x293   :  { %v418_v24 = vadd.f32 %v415_v21, %v398_v63  ;;  %v417_v26 = vmul.f32 0.6931472, %v752_v22 }
 0x295   :  { %v419_v28 = vadd.f32 %v417_v26, %v401_v3  ;;  %v427_v29 = vperm.slane %v418_v24, %v914_v43 }
 0x297   :  { %v428_v30 = vperm.slane %v419_v28, %v914_v43 }
 0x299   :  { %v429_v31 = vsel %vm73_vm0, %v428_v30, %v427_v29 }
 0x29a   :  { %v431_v32 = vsel %vm424_vm5, %v429_v31, %v385_v51  ;;  %vm77_vm5 = vcmask 33792  }
 0x29b   :  { %v433_v33 = vrot.slane %v431_v32, 1  ;;  %v434_v34 = vperm.slane %v431_v32, 0 }
 0x29d   :  { %v435_v37 = vperm.slane %v433_v33, 0 }
 0x29e   :  { %v255_v35 = vpop.permute.xlu0 %254 }
 0x29f   :  { %v438_v36 = vadd.f32 %v434_v34, %v255_v35 }
 0x2a1   :  { %v304_v38 = vpop.permute.xlu1 %303  ;;  %v440_v39 = vadd.f32 %v438_v36, %v893_v13 }
 0x2a2   :  { %v439_v40 = vadd.f32 %v435_v37, %v304_v38  ;;  %v312_v37 = vperm.slane %v876_v4, 5  ;;  %v263_v38 = vperm.slane %v869_v2, 5 }
 0x2a3   :  { %v442_v41 = vsel %vm349_vm1, %v440_v39, -inf }
 0x2a4   :  { %443 = vmax.xlane.f32.xlu2 %v442_v41  ;;  %v441_v42 = vadd.f32 %v439_v40, %v893_v13 }
 0x2a6   :  { %v445_v44 = vsel %vm349_vm1, %v441_v42, -inf }
 0x2a7   :  { %446 = vmax.xlane.f32.xlu1 %v445_v44 }
 0x2c0   :  { %468 = vperm.xlu1 %724, %v466_v45  }
 0x2c8   :  { %727 = vset.pattern.permute.xlu1 %v862_v1 }
 0x317   :  { %v444_v46 = vpop.xlane.xlu2 %443 }
 0x318   :  { %v448_v47 = vsub.f32 %v440_v39, %v444_v46 }
 0x31a   :  { %v450_v48 = vmul.f32 1.442695, %v448_v47  ;;  %v447_v49 = vpop.xlane.xlu1 %446 }
 0x31b   :  { %v449_v50 = vsub.f32 %v441_v42, %v447_v49 }
 0x31c   :  { %753 = vpow2.f32 %v450_v48 }
 0x31d   :  { %v452_v51 = vmul.f32 1.442695, %v449_v50 }
 0x31f   :  { %755 = vpow2.f32 %v452_v51 }
 0x322   :  { %v754_v52 = vpop.eup %753 }
 0x323   :  { %v454_v53 = vsel %vm349_vm1, %v754_v52, 0.0 }
 0x324   :  { %455 = vadd.xlane.f32.xlu0 %v454_v53 }
 0x325   :  { %v756_v54 = vpop.eup %755 }
 0x326   :  { %v457_v55 = vsel %vm349_vm1, %v756_v54, 0.0 }
 0x327   :  { %458 = vadd.xlane.f32.xlu2 %v457_v55 }
 0x332   :  { %v469_v3 = vpop.permute.xlu1 %468 }
 0x333   :  { %vm470_vm7 = vcmp.eq.s32.totalorder %v469_v3, 1 }
 0x338   :  { %310 = vperm.xlu0 %723, %v305_v56  }
 0x33f   :  { %261 = vperm.xlu2 %725, %v256_v57  }
 0x347   :  { %726 = vset.pattern.permute.xlu2 %v823_v25 }
 0x397   :  { %v456_v58 = vpop.xlane.xlu0 %455 }
 0x398   :  { %757 = vlog2.f32 %v456_v58 }
 0x39a   :  { %v459_v59 = vpop.xlane.xlu2 %458 }
 0x39b   :  { %759 = vlog2.f32 %v459_v59 }
 0x39e   :  { %v758_v60 = vpop.eup %757 }
 0x39f   :  { %v461_v61 = vmul.f32 0.6931472, %v758_v60 }
 0x3a1   :  { %v760_v62 = vpop.eup %759  ;;  %v464_v63 = vadd.f32 %v461_v61, %v444_v46 }
 0x3a2   :  { %v463_v0 = vmul.f32 0.6931472, %v760_v62  ;;  %v262_v12 = vpop.permute.xlu2 %261 }
 0x3a3   :  { %v473_v7 = vperm.slane %v464_v63, %v914_v43 }
 0x3a4   :  { %v465_v5 = vadd.f32 %v463_v0, %v447_v49  ;;  %v558_v0 = vsel %vm232_vm10, 1, %v823_v25 }
 0x3a6   :  { %v474_v9 = vperm.slane %v465_v5, %v914_v43 }
 0x3a8   :  { %v475_v10 = vsel %vm73_vm0, %v474_v9, %v473_v7 }
 0x3a9   :  { %v477_v11 = vsel %vm470_vm7, %v475_v10, %v431_v32  ;;  %v512_v32 = vsel %vm231_vm8, 1, %v823_v25  ;;  %vm180_vm7 = vcmask 50176   ;;  %vm678_vm8 = vcmp.eq.s32.totalorder %v862_v1, %v914_v43 }
 0x3aa   :  { %v479_v14 = vrot.slane %v477_v11, 1  ;;  %v480_v15 = vperm.slane %v477_v11, 0  ;;  %v311_v18 = vpop.permute.xlu0 %310 }
 0x3ac   :  { %v481_v16 = vperm.slane %v479_v14, 0  ;;  %v484_v17 = vadd.f32 %v480_v15, %v262_v12 }
 0x3ae   :  { %v485_v19 = vadd.f32 %v481_v16, %v311_v18  ;;  %v486_v20 = vadd.f32 %v484_v17, %v893_v13  ;;  %v319_v17 = vperm.slane %v876_v4, 6  ;;  %v270_v18 = vperm.slane %v869_v2, 6 }
 0x3b0   :  { %v488_v21 = vsel %vm349_vm1, %v486_v20, -inf  ;;  %v487_v22 = vadd.f32 %v485_v19, %v893_v13 }
 0x3b1   :  { %489 = vmax.xlane.f32.xlu1 %v488_v21 }
 0x3b2   :  { %v491_v24 = vsel %vm349_vm1, %v487_v22, -inf }
 0x3b3   :  { %492 = vmax.xlane.f32.xlu2 %v491_v24 }
 0x3cb   :  { %514 = vperm.xlu2 %726, %v512_v32  }
 0x3d3   :  { %729 = vset.pattern.permute.xlu2 %v862_v1 }
 0x424   :  { %v490_v26 = vpop.xlane.xlu1 %489 }
 0x425   :  { %v494_v27 = vsub.f32 %v486_v20, %v490_v26 }
 0x426   :  { %v493_v28 = vpop.xlane.xlu2 %492 }
 0x427   :  { %v496_v29 = vmul.f32 1.442695, %v494_v27  ;;  %v495_v30 = vsub.f32 %v487_v22, %v493_v28 }
 0x429   :  { %761 = vpow2.f32 %v496_v29  ;;  %v498_v31 = vmul.f32 1.442695, %v495_v30 }
 0x42b   :  { %763 = vpow2.f32 %v498_v31 }
 0x42e   :  { %v515_v47 = vpop.permute.xlu2 %514 }
 0x42f   :  { %v762_v33 = vpop.eup %761  ;;  %vm516_vm9 = vcmp.eq.s32.totalorder %v515_v47, 1 }
 0x430   :  { %v500_v34 = vsel %vm349_vm1, %v762_v33, 0.0 }
 0x431   :  { %v764_v35 = vpop.eup %763  ;;  %501 = vadd.xlane.f32.xlu0 %v500_v34 }
 0x432   :  { %v503_v36 = vsel %vm349_vm1, %v764_v35, 0.0 }
 0x433   :  { %504 = vadd.xlane.f32.xlu1 %v503_v36 }
 0x445   :  { %317 = vperm.xlu0 %723, %v312_v37  }
 0x44c   :  { %268 = vperm.xlu1 %727, %v263_v38  }
 0x44d   :  { %728 = vset.pattern.permute.xlu0 %v823_v25 }
 0x4a4   :  { %v502_v39 = vpop.xlane.xlu0 %501 }
 0x4a5   :  { %765 = vlog2.f32 %v502_v39 }
 0x4a6   :  { %v505_v40 = vpop.xlane.xlu1 %504 }
 0x4a7   :  { %767 = vlog2.f32 %v505_v40 }
 0x4ab   :  { %v766_v41 = vpop.eup %765 }
 0x4ac   :  { %v507_v42 = vmul.f32 0.6931472, %v766_v41 }
 0x4ad   :  { %v768_v44 = vpop.eup %767 }
 0x4ae   :  { %v510_v45 = vadd.f32 %v507_v42, %v490_v26  ;;  %v509_v46 = vmul.f32 0.6931472, %v768_v44 }
 0x4b0   :  { %v511_v48 = vadd.f32 %v509_v46, %v493_v28  ;;  %v519_v49 = vperm.slane %v510_v45, %v914_v43  ;;  %v26_v46 = vld [vmem:[%s1083_s1] sm:$0x3] }
 0x4b1   :  { %v33_v47 = vperm.slane %v26_v46, 0 }
 0x4b2   :  { %v520_v50 = vperm.slane %v511_v48, %v914_v43  ;;  %v604_v48 = vsel %vm233_vm13, 1, %v823_v25 }
 0x4b4   :  { %v521_v51 = vsel %vm73_vm0, %v520_v50, %v519_v49  ;;  %v277_v50 = vperm.slane %v869_v2, 7 }
 0x4b5   :  { %v523_v52 = vsel %vm516_vm9, %v521_v51, %v477_v11  ;;  %vm690_vm9 = vcmask 8192  }
 0x4b6   :  { %v525_v53 = vrot.slane %v523_v52, 1  ;;  %v526_v58 = vperm.slane %v523_v52, 0 }
 0x4b7   :  { %v318_v55 = vpop.permute.xlu0 %317 }
 0x4b8   :  { %v527_v54 = vperm.slane %v525_v53, 0 }
 0x4ba   :  { %v531_v56 = vadd.f32 %v527_v54, %v318_v55 }
 0x4bc   :  { %v533_v57 = vadd.f32 %v531_v56, %v893_v13 }
 0x4be   :  { %v269_v59 = vpop.permute.xlu1 %268  ;;  %v537_v60 = vsel %vm349_vm1, %v533_v57, -inf }
 0x4bf   :  { %v530_v61 = vadd.f32 %v526_v58, %v269_v59  ;;  %538 = vmax.xlane.f32.xlu0 %v537_v60  ;;  %v824_v59 = vmov 0.0  }
 0x4c1   :  { %v532_v62 = vadd.f32 %v530_v61, %v893_v13 }
 0x4c3   :  { %v534_v63 = vsel %vm349_vm1, %v532_v62, -inf }
 0x4c4   :  { %535 = vmax.xlane.f32.xlu2 %v534_v63  ;;  %v326_v63 = vperm.slane %v876_v4, 7 }
 0x4d3   :  { %560 = vperm.xlu0 %728, %v558_v0   ;;  %v40_v0 = vperm.slane %v26_v46, 1 }
 0x4db   :  { %731 = vset.pattern.permute.xlu0 %v862_v1 }
 0x532   :  { %v539_v3 = vpop.xlane.xlu0 %538 }
 0x533   :  { %v541_v5 = vsub.f32 %v533_v57, %v539_v3 }
 0x535   :  { %v544_v7 = vmul.f32 1.442695, %v541_v5 }
 0x537   :  { %769 = vpow2.f32 %v544_v7  ;;  %v536_v9 = vpop.xlane.xlu2 %535 }
 0x538   :  { %v540_v10 = vsub.f32 %v532_v62, %v536_v9 }
 0x53a   :  { %v542_v11 = vmul.f32 1.442695, %v540_v10 }
 0x53c   :  { %771 = vpow2.f32 %v542_v11 }
 0x53d   :  { %v770_v12 = vpop.eup %769 }
 0x53e   :  { %v549_v14 = vsel %vm349_vm1, %v770_v12, 0.0 }
 0x53f   :  { %550 = vadd.xlane.f32.xlu2 %v549_v14 }
 0x542   :  { %v772_v15 = vpop.eup %771 }
 0x543   :  { %v546_v16 = vsel %vm349_vm1, %v772_v15, 0.0 }
 0x544   :  { %547 = vadd.xlane.f32.xlu1 %v546_v16 }
 0x545   :  { %v561_v28 = vpop.permute.xlu0 %560 }
 0x546   :  { %vm562_vm11 = vcmp.eq.s32.totalorder %v561_v28, 1 }
 0x557   :  { %324 = vperm.xlu2 %729, %v319_v17  }
 0x55d   :  { %275 = vperm.xlu1 %727, %v270_v18  }
 0x565   :  { %730 = vset.pattern.permute.xlu1 %v823_v25 }
 0x5b2   :  { %v551_v19 = vpop.xlane.xlu2 %550 }
 0x5b3   :  { %773 = vlog2.f32 %v551_v19 }
 0x5b7   :  { %v548_v20 = vpop.xlane.xlu1 %547 }
 0x5b8   :  { %775 = vlog2.f32 %v548_v20 }
 0x5b9   :  { %v774_v21 = vpop.eup %773 }
 0x5ba   :  { %v555_v22 = vmul.f32 0.6931472, %v774_v21  ;;  %v325_v35 = vpop.permute.xlu2 %324 }
 0x5bc   :  { %v557_v26 = vadd.f32 %v555_v22, %v539_v3 }
 0x5be   :  { %v776_v24 = vpop.eup %775  ;;  %v566_v30 = vperm.slane %v557_v26, %v914_v43 }
 0x5bf   :  { %v553_v27 = vmul.f32 0.6931472, %v776_v24 }
 0x5c1   :  { %v556_v29 = vadd.f32 %v553_v27, %v536_v9 }
 0x5c3   :  { %v565_v31 = vperm.slane %v556_v29, %v914_v43 }
 0x5c5   :  { %v567_v32 = vsel %vm73_vm0, %v566_v30, %v565_v31 }
 0x5c6   :  { %v979_v33 = vsel %vm562_vm11, %v567_v32, %v523_v52 }
 0x5c7   :  { %v571_v34 = vrot.slane %v979_v33, 1  ;;  %v572_v39 = vperm.slane %v979_v33, 0 }
 0x5c9   :  { %v573_v36 = vperm.slane %v571_v34, 0 }
 0x5cb   :  { %v577_v37 = vadd.f32 %v573_v36, %v325_v35  ;;  %v27_v35 = vld [vmem:[%s1084_s2] sm:$0x3]  ;;  %s825_s2 = smov [#allocation2]  }
 0x5cc   :  { %v53_v36 = vperm.slane %v27_v35, 0  ;;  %s697_s30 = sshll.u32 %s825_s2, 4  ;;  %s698_s30 = int_to_ptr.vmem [resolvable:$true] %s697_s30 }
 0x5cd   :  { %v579_v38 = vadd.f32 %v577_v37, %v893_v13  ;;  %v650_v37 = vsel %vm234_vm3, 1, %v823_v25 }
 0x5cf   :  { %v276_v40 = vpop.permute.xlu1 %275  ;;  %v583_v41 = vsel %vm349_vm1, %v579_v38, -inf }
 0x5d0   :  { %v576_v42 = vadd.f32 %v572_v39, %v276_v40  ;;  %584 = vmax.xlane.f32.xlu1 %v583_v41 }
 0x5d2   :  { %v578_v44 = vadd.f32 %v576_v42, %v893_v13 }
 0x5d4   :  { %v580_v45 = vsel %vm349_vm1, %v578_v44, -inf }
 0x5d5   :  { %581 = vmax.xlane.f32.xlu2 %v580_v45 }
 0x5e9   :  { %606 = vperm.xlu1 %730, %v604_v48   ;;  %v60_v48 = vperm.slane %v27_v35, 1 }
 0x5ed   :  { %38 = vperm.xlu2 %729, %v33_v47  }
 0x5f1   :  { %732 = vset.pattern.permute.xlu1 %v862_v1 }
 0x5f9   :  { %282 = vperm.xlu1 %732, %v277_v50  }
 0x643   :  { %v585_v49 = vpop.xlane.xlu1 %584 }
 0x644   :  { %v587_v51 = vsub.f32 %v579_v38, %v585_v49 }
 0x646   :  { %v590_v52 = vmul.f32 1.442695, %v587_v51 }
 0x648   :  { %777 = vpow2.f32 %v590_v52  ;;  %v582_v53 = vpop.xlane.xlu2 %581 }
 0x649   :  { %v586_v54 = vsub.f32 %v578_v44, %v582_v53 }
 0x64b   :  { %v588_v55 = vmul.f32 1.442695, %v586_v54 }
 0x64d   :  { %779 = vpow2.f32 %v588_v55 }
 0x64e   :  { %v778_v56 = vpop.eup %777 }
 0x64f   :  { %v595_v57 = vsel %vm349_vm1, %v778_v56, 0.0 }
 0x650   :  { %v39_v58 = vpop.permute.xlu2 %38  ;;  %596 = vadd.xlane.f32.xlu2 %v595_v57 }
 0x651   :  { %vm47_vm14 = vcmp.eq.s32.totalorder %v914_v43, %v39_v58 }
 0x652   :  { %v1001_v60 = vsel %vm47_vm14, 1.0, %v824_v59 }
 0x653   :  { %v780_v61 = vpop.eup %779  ;;  %711 = vmatmul.msk.f32.vlgmr.msra.gmra.mxu0 %vm83_vm12, %v1001_v60 }
 0x654   :  { %v592_v62 = vsel %vm349_vm1, %v780_v61, 0.0 }
 0x655   :  { %593 = vadd.xlane.f32.xlu0 %v592_v62 }
 0x65b   :  { %v607_v11 = vpop.permute.xlu1 %606 }
 0x65c   :  { %vm608_vm15 = vcmp.eq.s32.totalorder %v607_v11, 1 }
 0x668   :  { %331 = vperm.xlu2 %729, %v326_v63  }
 0x669   :  { %45 = vperm.xlu0 %731, %v40_v0  }
 0x66b   :  { %v283_v20 = vpop.permute.xlu1 %282 }
 0x670   :  { %733 = vset.pattern.permute.xlu2 %v823_v25 }
 0x6c3   :  { %v597_v3 = vpop.xlane.xlu2 %596 }
 0x6c4   :  { %781 = vlog2.f32 %v597_v3 }
 0x6c8   :  { %v594_v5 = vpop.xlane.xlu0 %593 }
 0x6c9   :  { %783 = vlog2.f32 %v594_v5  ;;  %v216_v5 = vperm.slane %v882_v6, 1 }
 0x6ca   :  { %v782_v7 = vpop.eup %781 }
 0x6cb   :  { %v601_v9 = vmul.f32 0.6931472, %v782_v7  ;;  %v332_v27 = vpop.permute.xlu2 %331 }
 0x6cd   :  { %v603_v12 = vadd.f32 %v601_v9, %v585_v49 }
 0x6cf   :  { %v784_v10 = vpop.eup %783  ;;  %v612_v16 = vperm.slane %v603_v12, %v914_v43 }
 0x6d0   :  { %v599_v14 = vmul.f32 0.6931472, %v784_v10 }
 0x6d2   :  { %v602_v15 = vadd.f32 %v599_v14, %v582_v53 }
 0x6d4   :  { %v611_v17 = vperm.slane %v602_v15, %v914_v43  ;;  %v134_v15 = vpop.f32.mrf.mxu0 }
 0x6d6   :  { %v613_v18 = vsel %vm73_vm0, %v612_v16, %v611_v17  ;;  %v159_v17 = vrot.slane %v1001_v60, 1 }
 0x6d7   :  { %v1012_v19 = vsel %vm608_vm15, %v613_v18, %v979_v33 }
 0x6d8   :  { %v617_v21 = vrot.slane %v1012_v19, 1  ;;  %v618_v22 = vperm.slane %v1012_v19, 0 }
 0x6da   :  { %v619_v24 = vperm.slane %v617_v21, 0  ;;  %v622_v26 = vadd.f32 %v618_v22, %v283_v20 }
 0x6db   :  { %v46_v28 = vpop.permute.xlu0 %45 }
 0x6dc   :  { %vm48_vm2 = vcmp.eq.s32.totalorder %v914_v43, %v46_v28  ;;  %v624_v29 = vadd.f32 %v622_v26, %v893_v13  ;;  %v623_v30 = vadd.f32 %v619_v24, %v332_v27  ;;  %v163_v24 = vmul.f32 %v159_v17, %v134_v15 }
 0x6dd   :  { %v1019_v31 = vsel %vm48_vm2, 1.0, %v824_v59 }
 0x6de   :  { %v626_v32 = vsel %vm349_vm1, %v624_v29, -inf  ;;  %v625_v33 = vadd.f32 %v623_v30, %v893_v13  ;;  %713 = vmatmul.msk.f32.vlgmr.msra.gmra.mxu1 %vm83_vm12, %v1019_v31  ;;  %v102_v13 = vadd.s32 1, %v862_v1  ;;  %v160_v22 = vrot.slane %v1019_v31, 1 }
 0x6df   :  { %627 = vmax.xlane.f32.xlu1 %v626_v32 }
 0x6e0   :  { %v629_v34 = vsel %vm349_vm1, %v625_v33, -inf }
 0x6e1   :  { %630 = vmax.xlane.f32.xlu2 %v629_v34  ;;  %v72_v34 = vrot.slane %v1019_v31, 7 }
 0x6f8   :  { %58 = vperm.xlu1 %732, %v53_v36  }
 0x6f9   :  { %652 = vperm.xlu2 %733, %v650_v37  }
 0x700   :  { %735 = vset.pattern.permute.xlu1 %v102_v13 }
 0x701   :  { %734 = vset.pattern.permute.xlu2 %v102_v13 }
 0x709   :  { %104 = vperm.xlu2 %734, %v53_v36  }
 0x752   :  { %v628_v38 = vpop.xlane.xlu1 %627 }
 0x753   :  { %v632_v39 = vsub.f32 %v624_v29, %v628_v38 }
 0x754   :  { %v631_v40 = vpop.xlane.xlu2 %630 }
 0x755   :  { %v634_v41 = vmul.f32 1.442695, %v632_v39  ;;  %v633_v42 = vsub.f32 %v625_v33, %v631_v40 }
 0x757   :  { %785 = vpow2.f32 %v634_v41  ;;  %v636_v44 = vmul.f32 1.442695, %v633_v42 }
 0x759   :  { %787 = vpow2.f32 %v636_v44 }
 0x75c   :  { %v653_v53 = vpop.permute.xlu2 %652 }
 0x75d   :  { %v786_v45 = vpop.eup %785  ;;  %vm654_vm4 = vcmp.eq.s32.totalorder %v653_v53, 1 }
 0x75e   :  { %v638_v23 = vsel %vm349_vm1, %v786_v45, 0.0  ;;  %v74_v45 = vsel %vm73_vm0, %v72_v34, %v1001_v60 }
 0x75f   :  { %v788_v46 = vpop.eup %787  ;;  %639 = vadd.xlane.f32.xlu0 %v638_v23 }
 0x760   :  { %v641_v47 = vsel %vm349_vm1, %v788_v46, 0.0  ;;  %vm167_vm1 = vcmask 38912  }
 0x761   :  { %642 = vadd.xlane.f32.xlu1 %v641_v47 }
 0x764   :  { %v105_v61 = vpop.permute.xlu2 %104 }
 0x765   :  { %v198_v0 = vmul.f32 %v1001_v60, %v105_v61  ;;  %v165_v30 = vmul.f32 %v163_v24, %v105_v61 }
 0x767   :  { %v200_v10 = vsel %vm167_vm1, %v198_v0, 0.0  ;;  %v168_v42 = vsel %vm167_vm1, %v165_v30, 0.0 }
 0x768   :  { %v201_v18 = vrot.slane %v200_v10, 4 }
 0x76a   :  { %v59_v49 = vpop.permute.xlu1 %58  ;;  %v202_v32 = vadd.f32 %v201_v18, %v200_v10 }
 0x76b   :  { %v67_v50 = vmul.f32 %v1001_v60, %v59_v49 }
 0x76d   :  { %v81_v51 = vmul.f32 %v67_v50, %v869_v2  ;;  %v184_v7 = vsel %vm83_vm12, %v67_v50, 0.0 }
 0x76e   :  { %v185_v12 = vrot.slane %v184_v7, 4 }
 0x76f   :  { %v84_v52 = vsel %vm83_vm12, %v81_v51, 0.0 }
 0x770   :  { %v186_v26 = vadd.f32 %v185_v12, %v184_v7 }
 0x772   :  { %v187_v37 = vrot.slane %v186_v26, 2 }
 0x773   :  { %65 = vperm.xlu0 %731, %v60_v48  }
 0x774   :  { %v188_v23 = vadd.f32 %v187_v37, %v186_v26 }
 0x776   :  { %v189_v50 = vrot.slane %v188_v23, 1 }
 0x77a   :  { %110 = vperm.xlu1 %735, %v60_v48  }
 0x77b   :  { %736 = vset.pattern.permute.xlu0 %v823_v25 }
 0x79d   :  { %85 = vadd.xlane.f32.xlu0 %v84_v52 }
 0x7d2   :  { %v640_v54 = vpop.xlane.xlu0 %639 }
 0x7d3   :  { %789 = vlog2.f32 %v640_v54 }
 0x7d4   :  { %v643_v55 = vpop.xlane.xlu1 %642 }
 0x7d5   :  { %791 = vlog2.f32 %v643_v55 }
 0x7d9   :  { %v790_v56 = vpop.eup %789 }
 0x7da   :  { %v645_v57 = vmul.f32 0.6931472, %v790_v56  ;;  %v190_v56 = vadd.f32 %v189_v50, %v188_v23 }
 0x7db   :  { %v792_v58 = vpop.eup %791 }
 0x7dc   :  { %v648_v62 = vadd.f32 %v645_v57, %v628_v38  ;;  %v647_v63 = vmul.f32 0.6931472, %v792_v58 }
 0x7de   :  { %v649_v25 = vadd.f32 %v647_v63, %v631_v40  ;;  %v657_v2 = vperm.slane %v648_v62, %v914_v43  ;;  %v203_v40 = vrot.slane %v202_v32, 2 }
 0x7e0   :  { %v658_v3 = vperm.slane %v649_v25, %v914_v43  ;;  %v204_v47 = vadd.f32 %v203_v40, %v202_v32 }
 0x7e2   :  { %v659_v9 = vsel %vm73_vm0, %v658_v3, %v657_v2  ;;  %v205_v52 = vrot.slane %v204_v47, 1 }
 0x7e3   :  { %v661_v11 = vsel %vm654_vm4, %v659_v9, %v1012_v19  ;;  %v156_v19 = vpop.f32.mrf.mxu1 }
 0x7e4   :  { %v662_v14 = vadd.f32 %v661_v11, %v216_v5  ;;  %v164_v35 = vmul.f32 %v160_v22, %v156_v19  ;;  %v206_v60 = vadd.f32 %v205_v52, %v204_v47 }
 0x7e5   :  { %v66_v16 = vpop.permute.xlu0 %65 }
 0x7e6   :  { %v68_v20 = vmul.f32 %v1019_v31, %v66_v16  ;;  %v663_v21 = vsel %vm77_vm5, %v662_v14, -inf  ;;  %v214_v62 = vsub.f32 %v190_v56, %v206_v60 }
 0x7e7   :  { %664 = vmax.xlane.f32.xlu2 %v663_v21 }
 0x7e8   :  { %v191_v27 = vsel %vm83_vm12, %v68_v20, 0.0  ;;  %v82_v28 = vmul.f32 %v68_v20, %v876_v4 }
 0x7e9   :  { %v192_v29 = vrot.slane %v191_v27, 4 }
 0x7ea   :  { %v87_v33 = vsel %vm83_vm12, %v82_v28, 0.0 }
 0x7eb   :  { %v193_v36 = vadd.f32 %v192_v29, %v191_v27  ;;  %88 = vadd.xlane.f32.xlu1 %v87_v33 }
 0x7ec   :  { %v111_v13 = vpop.permute.xlu1 %110 }
 0x7ed   :  { %v166_v38 = vmul.f32 %v164_v35, %v111_v13  ;;  %v199_v39 = vmul.f32 %v1019_v31, %v111_v13  ;;  %v194_v41 = vrot.slane %v193_v36, 2  ;;  %v76_v31 = vmul.f32 %v74_v45, %v69_v8 }
 0x7ef   :  { %v207_v4 = vsel %vm167_vm1, %v199_v39, 0.0  ;;  %169 = vadd.xlane.f32.xlu2 %v168_v42  ;;  %v171_v44 = vsel %vm167_vm1, %v166_v38, 0.0  ;;  %v195_v48 = vadd.f32 %v194_v41, %v193_v36  ;;  %v78_v55 = vsel %vm77_vm5, %v76_v31, 0.0 }
 0x7f0   :  { %v208_v46 = vrot.slane %v207_v4, 4  ;;  %172 = vadd.xlane.f32.xlu0 %v171_v44  ;;  %v714_v36 = vsel %vm678_vm8, 1.0, %v824_v59 }
 0x7f1   :  { %v196_v53 = vrot.slane %v195_v48, 1 }
 0x7f2   :  { %v209_v49 = vadd.f32 %v208_v46, %v207_v4 }
 0x7f3   :  { %v197_v58 = vadd.f32 %v196_v53, %v195_v48 }
 0x7f4   :  { %v210_v51 = vrot.slane %v209_v49, 2 }
 0x7f6   :  { %v211_v54 = vadd.f32 %v210_v51, %v209_v49 }
 0x7f7   :  { %79 = vadd.xlane.f32.xlu2 %v78_v55 }
 0x7f8   :  { %v212_v57 = vrot.slane %v211_v54, 1 }
 0x7fa   :  { %v213_v61 = vadd.f32 %v212_v57, %v211_v54 }
 0x7fc   :  { %v215_v63 = vsub.f32 %v197_v58, %v213_v61 }
 0x7fe   :  { %v219_v25 = vsel %vm73_vm0, %v215_v63, %v214_v62 }
 0x7ff   :  { %v221_v8 = vmul.f32 %v219_v25, %v216_v5 }
 0x801   :  { %v222_v0 = vsel %vm77_vm5, %v221_v8, 0.0 }
 0x802   :  { %223 = vadd.xlane.f32.xlu2 %v222_v0 }
 0x810   :  { %v86_v7 = vpop.xlane.xlu0 %85 }
 0x811   :  { %v92_v11 = vperm.slane %v86_v7, %v914_v43 }
 0x85a   :  { %v665_v2 = vpop.xlane.xlu2 %664 }
 0x85b   :  { %v666_v3 = vsub.f32 %v662_v14, %v665_v2 }
 0x85d   :  { %v667_v9 = vmul.f32 1.442695, %v666_v3 }
 0x85e   :  { %v89_v10 = vpop.xlane.xlu1 %88 }
 0x85f   :  { %793 = vpow2.f32 %v667_v9  ;;  %v93_v12 = vperm.slane %v89_v10, %v914_v43 }
 0x861   :  { %v94_v15 = vsel %vm73_vm0, %v93_v12, %v92_v11 }
 0x862   :  { %v97_v16 = vsel %vm96_vm6, %v94_v15, 0.0  ;;  %v170_v6 = vpop.xlane.xlu2 %169 }
 0x863   :  { %98 = vadd.xlane.f32.xlu0 %v97_v16  ;;  %v173_v5 = vpop.xlane.xlu0 %172  ;;  %v176_v14 = vperm.slane %v170_v6, %v914_v43 }
 0x864   :  { %v177_v20 = vperm.slane %v173_v5, %v914_v43 }
 0x865   :  { %v794_v17 = vpop.eup %793 }
 0x866   :  { %v669_v18 = vsel %vm77_vm5, %v794_v17, 0.0  ;;  %v178_v21 = vsel %vm73_vm0, %v177_v20, %v176_v14  ;;  %vm682_vm0 = vcmask 9216  }
 0x867   :  { %670 = vadd.xlane.f32.xlu1 %v669_v18  ;;  %v181_v22 = vsel %vm180_vm7, %v178_v21, 0.0 }
 0x86a   :  { %v80_v26 = vpop.xlane.xlu2 %79 }
 0x86f   :  { %182 = vadd.xlane.f32.xlu1 %v181_v22 }
 0x875   :  { %v224_v33 = vpop.xlane.xlu2 %223 }
 0x8d6   :  { %v99_v19 = vpop.xlane.xlu0 %98 }
 0x8d7   :  { %v225_v28 = vadd.f32 %v99_v19, %v80_v26 }
 0x8da   :  { %v671_v24 = vpop.xlane.xlu1 %670 }
 0x8db   :  { %795 = vlog2.f32 %v671_v24 }
 0x8e1   :  { %v796_v27 = vpop.eup %795 }
 0x8e2   :  { %v673_v29 = vmul.f32 0.6931472, %v796_v27  ;;  %v183_v30 = vpop.xlane.xlu1 %182 }
 0x8e3   :  { %v226_v32 = vadd.f32 %v225_v28, %v183_v30 }
 0x8e4   :  { %v674_v34 = vadd.f32 %v673_v29, %v665_v2 }
 0x8e5   :  { %v227_v35 = vadd.f32 %v226_v32, %v224_v33 }
 0x8e7   :  { %v675_v37 = vsub.f32 %v227_v35, %v674_v34 }
 0x8e9   :  { %v681_v13 = vmul.f32 %v714_v36, %v675_v37 }
 0x8eb   :  { %v683_v38 = vsel %vm682_vm0, %v681_v13, 0.0 }
 0x8ec   :  { %v684_v39 = vrot.slane %v683_v38, 4 }
 0x8ee   :  { %v685_v40 = vadd.f32 %v684_v39, %v683_v38 }
 0x8f0   :  { %v686_v41 = vrot.slane %v685_v40, 2 }
 0x8f2   :  { %v687_v42 = vadd.f32 %v686_v41, %v685_v40 }
 0x8f4   :  { %v688_v1 = vrot.slane %v687_v42, 1 }
 0x8f6   :  { %v689_v43 = vadd.f32 %v688_v1, %v687_v42 }
 0x8f8   :  { %691 = vst.msk [vmem:[#allocation2] sm:$0x1] %vm690_vm9, %v689_v43 }
 0x8f9   :  { %702 = dma.vmem_to_hbm [thread:$0]  %s698_s30, 16, %s700_s9, [#allocation3]  }
 0x8fa   :  { %821 = dma.done.wait [#allocation3], 16  }
 0x8fb   :  { %822 = vsyncadd [#allocation3], 4294967280 }
 0x8fc   :  { %707 = vsyncpa [#allocation3], 1 }

</bundles_post_ra>
